<compile_context>
chip_gen: v6e
topology: v6e:2x2x1
jax: 0.10.0
libtpu: 0.0.40
codegen_flags: <defaults>
</compile_context>

<pallas_src>
import functools

import jax
import jax.numpy as jnp
from jax.experimental import pallas as pl
from jax.experimental.pallas import tpu as pltpu

NUM_FEAT_DIM = 3


def _reactive_kernel(last_ref, wt_ref, b_ref, out_ref):
    # last_ref: [block_b, 3]   (last timestep, first 3 features)
    # wt_ref:   [3, 3]         (pre-transposed weight: y = last @ wt == last @ W^T)
    # b_ref:    [1, 3]
    # out_ref:  [block_b, 3]
    last = last_ref[...]
    wt = wt_ref[...]
    b = b_ref[...]

    # Unrolled VPU broadcast-multiply-sum over k = 0..2 — no MXU, f32 math.
    y = (b
         + last[:, 0:1] * wt[0:1, :]
         + last[:, 1:2] * wt[1:2, :]
         + last[:, 2:3] * wt[2:3, :])

    # Single contiguous store (cheapest writeback shape, esp. on v5e's 1 vst slot).
    out_ref[...] = y.astype(out_ref.dtype)


def _reactive_linear_last(last, wt, bias_row, *, block_b):
    """last: [B, 3] f32, wt: [3, 3] f32 (transposed), bias_row: [1, 3]. Returns [B, 3]."""
    B = last.shape[0]
    grid = (pl.cdiv(B, block_b),)
    return pl.pallas_call(
        _reactive_kernel,
        out_shape=jax.ShapeDtypeStruct((B, NUM_FEAT_DIM), last.dtype),
        grid_spec=pltpu.PrefetchScalarGridSpec(
            num_scalar_prefetch=0,
            grid=grid,
            in_specs=[
                pl.BlockSpec((block_b, NUM_FEAT_DIM), lambda i: (i, 0)),
                pl.BlockSpec((NUM_FEAT_DIM, NUM_FEAT_DIM), lambda i: (0, 0)),
                pl.BlockSpec((1, NUM_FEAT_DIM), lambda i: (0, 0)),
            ],
            out_specs=pl.BlockSpec((block_b, NUM_FEAT_DIM), lambda i: (i, 0)),
        ),
        compiler_params=pltpu.CompilerParams(
            dimension_semantics=("parallel",)),
    )(last, wt, bias_row)


@functools.partial(jax.jit, static_argnames=("h_window",))
def reactive_forward(pos, weight, bias, *, h_window):
    """pos: [B, M, F]; weight: [3, 3]; bias: [3]. Returns [B, h_window, 3]."""
    B = pos.shape[0]

    # Slice in XLA so the kernel only ever sees [B, 3]; pre-transpose the weight
    # (XLA folds this at compile time — no in-kernel XLU transpose).
    last = pos[:, -1, :NUM_FEAT_DIM].astype(jnp.float32)        # [B, 3]
    wt = weight.astype(jnp.float32).T                           # [3, 3]
    b_row = bias.astype(jnp.float32).reshape(1, NUM_FEAT_DIM)   # [1, 3]

    # Batch tiling: whole B when small (block == full dim satisfies the (8,128)
    # rule); 512-row (8-aligned) blocks when B is large so v7x (64 MiB VMEM,
    # 2 TCs) and the default scoped-VMEM limits stay comfortable.
    block_b = B if B <= 512 else 512

    y = _reactive_linear_last(last, wt, b_row, block_b=block_b)  # [B, 3]
    y = y.astype(pos.dtype)

    # The expand over H_WINDOW commutes with the linear layer; broadcast in XLA.
    return jnp.broadcast_to(y[:, None, :], (B, h_window, NUM_FEAT_DIM))


if __name__ == "__main__":
    # Small shapes consistent with the module: batch=2, M_WINDOW=8, H_WINDOW=5, feat=3
    B, M_WINDOW, H_WINDOW, F = 2, 8, 5, 3

    key = jax.random.PRNGKey(0)
    k_pos, k_other, k_w, k_b = jax.random.split(key, 4)

    # x = (encoder_position_inputs, <ignored second element>)
    pos = jax.random.normal(k_pos, (B, M_WINDOW, F), dtype=jnp.float32)
    _other = jax.random.normal(k_other, (B, M_WINDOW, F), dtype=jnp.float32)  # unused, as in forward

    # Deterministic nn.Linear(3, 3) parameters (uniform init like PyTorch default)
    bound = 1.0 / jnp.sqrt(float(NUM_FEAT_DIM))
    weight = jax.random.uniform(k_w, (NUM_FEAT_DIM, NUM_FEAT_DIM),
                                minval=-bound, maxval=bound, dtype=jnp.float32)
    bias = jax.random.uniform(k_b, (NUM_FEAT_DIM,),
                              minval=-bound, maxval=bound, dtype=jnp.float32)

    out = reactive_forward(pos, weight, bias, h_window=H_WINDOW)
    out = jax.block_until_ready(out)

    # Pure-JAX reference for correctness
    last = pos[:, -1, :NUM_FEAT_DIM]                                   # [B, 3]
    ref = last @ weight.T + bias                                       # [B, 3]
    ref = jnp.broadcast_to(ref[:, None, :], (B, H_WINDOW, NUM_FEAT_DIM))

    assert out.shape == (B, H_WINDOW, NUM_FEAT_DIM)
    assert jnp.allclose(out, ref, atol=1e-5, rtol=1e-5), "mismatch vs reference"

    print("KERNEL_OK")
</pallas_src>

<mosaic_0001>
module attributes {stable_mosaic.version = 11 : i64} {
  func.func @_reactive_kernel(%arg0: i32, %arg1: memref<2x3xf32, #tpu.memory_space<vmem>>, %arg2: memref<3x3xf32, #tpu.memory_space<vmem>>, %arg3: memref<1x3xf32, #tpu.memory_space<vmem>>, %arg4: memref<2x3xf32, #tpu.memory_space<vmem>>) attributes {dimension_semantics = [#tpu.dimension_semantics<parallel>], iteration_bounds = array<i64: 1>, scalar_prefetch = 0 : i64, scratch_operands = 0 : i64, tpu.core_type = #tpu.core_type<tc>, window_params = [{transform_indices = @transform_0, window_bounds = array<i64: 2, 3>}, {pipeline_mode = #tpu.pipeline_mode<synchronous>, transform_indices = @transform_1, window_bounds = array<i64: 3, 3>}, {pipeline_mode = #tpu.pipeline_mode<synchronous>, transform_indices = @transform_2, window_bounds = array<i64: 1, 3>}, {transform_indices = @transform_3, window_bounds = array<i64: 2, 3>}]} {
    %c0 = arith.constant 0 : index
    %c0_0 = arith.constant 0 : index
    %0 = vector.load %arg1[%c0, %c0_0] : memref<2x3xf32, #tpu.memory_space<vmem>>, vector<2x3xf32>
    %c0_1 = arith.constant 0 : index
    %c0_2 = arith.constant 0 : index
    %1 = vector.load %arg2[%c0_1, %c0_2] : memref<3x3xf32, #tpu.memory_space<vmem>>, vector<3x3xf32>
    %c0_3 = arith.constant 0 : index
    %c0_4 = arith.constant 0 : index
    %2 = vector.load %arg3[%c0_3, %c0_4] : memref<1x3xf32, #tpu.memory_space<vmem>>, vector<1x3xf32>
    %3 = vector.extract_strided_slice %0 {offsets = [0, 0], sizes = [2, 1], strides = [1, 1]} : vector<2x3xf32> to vector<2x1xf32>
    %4 = vector.extract_strided_slice %1 {offsets = [0, 0], sizes = [1, 3], strides = [1, 1]} : vector<3x3xf32> to vector<1x3xf32>
    %5 = vector.broadcast %3 : vector<2x1xf32> to vector<2x3xf32>
    %6 = vector.broadcast %4 : vector<1x3xf32> to vector<2x3xf32>
    %7 = arith.mulf %5, %6 : vector<2x3xf32>
    %8 = vector.broadcast %2 : vector<1x3xf32> to vector<2x3xf32>
    %9 = arith.addf %8, %7 : vector<2x3xf32>
    %10 = vector.extract_strided_slice %0 {offsets = [0, 1], sizes = [2, 1], strides = [1, 1]} : vector<2x3xf32> to vector<2x1xf32>
    %11 = vector.extract_strided_slice %1 {offsets = [1, 0], sizes = [1, 3], strides = [1, 1]} : vector<3x3xf32> to vector<1x3xf32>
    %12 = vector.broadcast %10 : vector<2x1xf32> to vector<2x3xf32>
    %13 = vector.broadcast %11 : vector<1x3xf32> to vector<2x3xf32>
    %14 = arith.mulf %12, %13 : vector<2x3xf32>
    %15 = arith.addf %9, %14 : vector<2x3xf32>
    %16 = vector.extract_strided_slice %0 {offsets = [0, 2], sizes = [2, 1], strides = [1, 1]} : vector<2x3xf32> to vector<2x1xf32>
    %17 = vector.extract_strided_slice %1 {offsets = [2, 0], sizes = [1, 3], strides = [1, 1]} : vector<3x3xf32> to vector<1x3xf32>
    %18 = vector.broadcast %16 : vector<2x1xf32> to vector<2x3xf32>
    %19 = vector.broadcast %17 : vector<1x3xf32> to vector<2x3xf32>
    %20 = arith.mulf %18, %19 : vector<2x3xf32>
    %21 = arith.addf %15, %20 : vector<2x3xf32>
    %c0_5 = arith.constant 0 : index
    %c0_6 = arith.constant 0 : index
    %22 = vector.load %arg4[%c0_5, %c0_6] : memref<2x3xf32, #tpu.memory_space<vmem>>, vector<2x3xf32>
    tpu.vector_store %arg4[%c0_5, %c0_6], %21 {strides = array<i32>} : memref<2x3xf32, #tpu.memory_space<vmem>>, vector<2x3xf32>,
    return
  }
  func.func @transform_0(%arg0: i32) -> (i32, i32) {
    %c0_i32 = arith.constant 0 : i32
    %c0_i32_0 = arith.constant 0 : i32
    return %arg0, %c0_i32 : i32, i32
  }
  func.func @transform_1(%arg0: i32) -> (i32, i32) {
    %c0_i32 = arith.constant 0 : i32
    %c0_i32_0 = arith.constant 0 : i32
    %c0_i32_1 = arith.constant 0 : i32
    return %c0_i32, %c0_i32_0 : i32, i32
  }
  func.func @transform_2(%arg0: i32) -> (i32, i32) {
    %c0_i32 = arith.constant 0 : i32
    %c0_i32_0 = arith.constant 0 : i32
    %c0_i32_1 = arith.constant 0 : i32
    return %c0_i32, %c0_i32_0 : i32, i32
  }
  func.func @transform_3(%arg0: i32) -> (i32, i32) {
    %c0_i32 = arith.constant 0 : i32
    %c0_i32_0 = arith.constant 0 : i32
    return %arg0, %c0_i32 : i32, i32
  }
}

</mosaic_0001>

<bundles_post_ra>
// kernel: reactive_forward.1
= control target key start
LH: loop header
LB: loop body
LE: loop exit
PB: predicated region body
PF: predicated region fallthrough
CT: control target
= control target key end

     0   :  { %v68_v0 = vmov 0   ;;  %v69_v2 = vmov 2   ;;  %v70_v3 = vmov 1   ;;  %v22_v4 = vlaneseq  ;;  %s103_s0 = inlined_call_operand.vmem [shape: f32[2,3], index: 0, kind: input, shape index: {}]   ;;  %s104_s1 = inlined_call_operand.vmem [shape: f32[3,3], index: 1, kind: input, shape index: {}]   ;;  %s105_s2 = inlined_call_operand.vmem [shape: f32[1,3], index: 2, kind: input, shape index: {}]   ;;  %s106_s3 = inlined_call_operand.vmem [shape: f32[2,3], index: 3, kind: output, shape index: {}]  }
   0x1   :  { %64 = vset.pattern.permute.xlu0 %v68_v0  ;;  %v14_v1 = vld [vmem:[%s103_s0] sm:$0x3]  ;;  %66 = vset.pattern.permute.xlu1 %v69_v2  ;;  %vm54_vm0 = vcmask 17408  }
   0x2   :  { %19 = vperm.xlu0 %64, %v14_v1   ;;  %45 = vperm.xlu1 %66, %v14_v1   ;;  %v23_v5 = vshrl.u32 %v22_v4, 7  ;;  %v15_v7 = vld [vmem:[%s104_s1] sm:$0x7] }
   0x3   :  { %v60_v15 = vld [vmem:[%s105_s2] ss:$0 sm:$0xff] }
   0x4   :  { %v24_v6 = vsub.s32 0, %v23_v5  ;;  %v40_v9 = vsub.s32 1, %v23_v5  ;;  %v50_v10 = vsub.s32 2, %v23_v5 }
   0x6   :  { %65 = vset.pattern.permute.xlu0 %v70_v3  ;;  %v25_v8 = vrot.slane %v15_v7, %v24_v6  ;;  %v41_v13 = vrot.slane %v15_v7, %v40_v9  ;;  %v51_v14 = vrot.slane %v15_v7, %v50_v10 }
   0x7   :  { %35 = vperm.xlu0 %65, %v14_v1  }
   0xb   :  { %67 = vset.pattern.permute.xlu0 %v69_v2 }
  0x7d   :  { %v20_v11 = vpop.permute.xlu0 %19  ;;  %v46_v16 = vpop.permute.xlu1 %45 }
  0x7e   :  { %v26_v12 = vmul.f32 %v25_v8, %v20_v11  ;;  %v52_v20 = vmul.f32 %v51_v14, %v46_v16 }
  0x80   :  { %v33_v18 = vadd.f32 %v60_v15, %v26_v12 }
  0x82   :  { %v36_v17 = vpop.permute.xlu0 %35 }
  0x83   :  { %v42_v19 = vmul.f32 %v41_v13, %v36_v17 }
  0x85   :  { %v43_v21 = vadd.f32 %v42_v19, %v33_v18 }
  0x87   :  { %v53_v22 = vadd.f32 %v52_v20, %v43_v21 }
  0x89   :  { %55 = vst.msk [vmem:[%s106_s3] sm:$0x3] %vm54_vm0, %v53_v22 }

</bundles_post_ra>
